<compile_context>
chip_gen: v7x
topology: tpu7x:2x2x1
jax: 0.10.0
libtpu: 0.0.40
codegen_flags: <defaults>
</compile_context>

<pallas_src>
import math

import jax
import jax.numpy as jnp
from jax.experimental import pallas as pl
from jax.experimental.pallas import tpu as pltpu


_LANE_CANDIDATES = (2048, 1024, 512, 256, 128)


def _generation_params():
    """Returns (target tile bytes per input, vmem_limit_bytes or None, has 2 TCs)."""
    kind = ""
    try:
        devs = jax.devices()
        if devs:
            kind = (devs[0].device_kind or "").lower()
    except Exception:
        pass
    if "v7" in kind:
        # 8 MiB/input/buffer -> 32 MiB double-buffered for 2 inputs; 64 MiB physical.
        return 8 << 20, 48 << 20, True
    if "v6" in kind:
        # 128 MiB physical VMEM; raise the scoped limit and use large tiles.
        return 8 << 20, 64 << 20, False
    # v5e (16 MiB scoped-VMEM default) and unknown chips: conservative tiles.
    return 2 << 20, None, False


def _make_loss_kernel(tile_rows, rows_valid, ragged, batch):
    def kernel(mu_ref, logvar_ref, recons_ref, input_ref, mse_ref, kld_ref):
        # Per-tile sum of squared differences, accumulated in f32 regardless of
        # the input dtype. One full (1,8,128) partial block per grid step, so the
        # grid axis stays "parallel" (no shared accumulator).
        diff = recons_ref[...].astype(jnp.float32) - input_ref[...].astype(jnp.float32)
        sq = diff * diff
        if ragged:
            # The last tile sticks out past the real rows: zero those lanes.
            row0 = pl.program_id(0) * tile_rows
            rid = jax.lax.broadcasted_iota(jnp.int32, sq.shape, 0)
            sq = jnp.where(row0 + rid < rows_valid, sq, 0.0)
        mse_ref[...] = jnp.full(mse_ref.shape, jnp.sum(sq), dtype=jnp.float32)

        # KLD fused into grid step 0 (O(B*D) work, hidden under the tile DMA).
        @pl.when(pl.program_id(0) == 0)
        def _():
            mu = mu_ref[...].astype(jnp.float32)
            lv = logvar_ref[...].astype(jnp.float32)
            kld = -0.5 * jnp.sum(1.0 + lv - mu * mu - jnp.exp(lv)) * (1.0 / batch)
            kld_ref[...] = jnp.full(kld_ref.shape, kld, dtype=jnp.float32)

    return kernel


def vae_loss(recons, inp, mu, logvar, kld_weight: float = 0.00025):
    n_elems = math.prod(recons.shape)
    itemsize = jnp.dtype(recons.dtype).itemsize
    tile_bytes, vmem_limit, two_cores = _generation_params()

    # Lane-dense flatten with no data movement: pick the widest lane count
    # (multiple of 128) that divides numel exactly, so reshape is a free bitcast.
    lane = next((l for l in _LANE_CANDIDATES if n_elems % l == 0), None)
    if lane is None:
        # TODO(synk): numel not a multiple of 128 -- rare; fall back to a padded
        # copy (zeros contribute 0 to the squared-diff sum).
        lane = 128
        rows = pl.cdiv(n_elems, lane)
        pad = rows * lane - n_elems
    else:
        rows = n_elems // lane
        pad = 0

    def as_2d(x):
        flat = x.reshape(-1)
        if pad:
            flat = jnp.pad(flat, (0, pad))
        return flat.reshape(rows, lane)

    recons2d = as_2d(recons)
    inp2d = as_2d(inp)

    # Tile sizing by bytes (dtype-aware), sublane-aligned (multiple of 8 rows).
    max_rows = max(8, (tile_bytes // (lane * itemsize)) // 8 * 8)
    if rows <= max_rows:
        if two_cores and rows >= 16:
            # Split small/medium inputs into >=2 tiles so both v7x TCs get work.
            tile_rows = ((pl.cdiv(rows, 2) + 7) // 8) * 8
        else:
            tile_rows = rows                  # full first-dim extent: always legal
    else:
        tile_rows = max_rows
    grid = pl.cdiv(rows, tile_rows)
    ragged = grid * tile_rows != rows

    B, D = mu.shape
    kernel = _make_loss_kernel(tile_rows, rows, ragged, B)

    cp_kwargs = dict(dimension_semantics=("parallel",))
    if vmem_limit is not None:
        cp_kwargs["vmem_limit_bytes"] = vmem_limit

    mse_parts, kld_parts = pl.pallas_call(
        kernel,
        out_shape=(
            jax.ShapeDtypeStruct((grid, 8, 128), jnp.float32),   # per-tile MSE partial
            jax.ShapeDtypeStruct((grid, 8, 128), jnp.float32),   # KLD (block 0 valid)
        ),
        grid=(grid,),
        in_specs=[
            pl.BlockSpec(memory_space=pltpu.MemorySpace.VMEM),   # mu   (tiny, resident)
            pl.BlockSpec(memory_space=pltpu.MemorySpace.VMEM),   # logvar
            pl.BlockSpec((tile_rows, lane), lambda i: (i, 0)),   # recons tile
            pl.BlockSpec((tile_rows, lane), lambda i: (i, 0)),   # input  tile
        ],
        out_specs=(
            pl.BlockSpec((1, 8, 128), lambda i: (i, 0, 0)),
            pl.BlockSpec((1, 8, 128), lambda i: (i, 0, 0)),
        ),
        compiler_params=pltpu.CompilerParams(**cp_kwargs),
        cost_estimate=pl.CostEstimate(
            flops=3 * n_elems + 6 * B * D,
            transcendentals=B * D,
            bytes_accessed=(2 * n_elems * itemsize
                            + 2 * B * D * jnp.dtype(mu.dtype).itemsize
                            + 2 * grid * 8 * 128 * 4),
        ),
    )(mu, logvar, recons2d, inp2d)

    # Final scalar combine in the wrapper: one global 1/N scale (so tiling and the
    # masked tail never change the mean) + weighted KLD.
    recons_loss = jnp.sum(mse_parts[:, 0, 0]) * (1.0 / n_elems)
    kld_loss = kld_parts[0, 0, 0]
    return recons_loss + kld_weight * kld_loss


def _reference(recons, inp, mu, logvar, kld_weight: float = 0.00025):
    recons_loss = jnp.mean((recons - inp) ** 2)
    kld_loss = jnp.mean(
        -0.5 * jnp.sum(1 + logvar - mu ** 2 - jnp.exp(logvar), axis=1), axis=0)
    return recons_loss + kld_weight * kld_loss


if __name__ == "__main__":
    key = jax.random.PRNGKey(0)
    k1, k2, k3, k4 = jax.random.split(key, 4)

    B, C, H, W = 2, 4, 16, 16   # NCHW image tensors
    D = 32                      # latent dim

    recons = jax.random.normal(k1, (B, C, H, W), dtype=jnp.float32)
    inp = jax.random.normal(k2, (B, C, H, W), dtype=jnp.float32)
    mu = 0.1 * jax.random.normal(k3, (B, D), dtype=jnp.float32)
    logvar = 0.1 * jax.random.normal(k4, (B, D), dtype=jnp.float32)

    loss = jax.block_until_ready(vae_loss(recons, inp, mu, logvar))
    ref = jax.block_until_ready(_reference(recons, inp, mu, logvar))

    assert jnp.allclose(loss, ref, rtol=1e-5, atol=1e-6), (loss, ref)
    print("KERNEL_OK")
</pallas_src>

<mosaic_0001>
module attributes {stable_mosaic.version = 11 : i64} {
  func.func @kernel(%arg0: i32, %arg1: memref<2x32xf32, #tpu.memory_space<vmem>>, %arg2: memref<2x32xf32, #tpu.memory_space<vmem>>, %arg3: memref<1x2048xf32, #tpu.memory_space<vmem>>, %arg4: memref<1x2048xf32, #tpu.memory_space<vmem>>, %arg5: memref<1x8x128xf32, #tpu.memory_space<vmem>>, %arg6: memref<1x8x128xf32, #tpu.memory_space<vmem>>) attributes {dimension_semantics = [#tpu.dimension_semantics<parallel>], iteration_bounds = array<i64: 1>, scalar_prefetch = 0 : i64, scratch_operands = 0 : i64, tpu.core_type = #tpu.core_type<tc>, window_params = [{pipeline_mode = #tpu.pipeline_mode<synchronous>, transform_indices = @transform_0, window_bounds = array<i64: 2, 32>}, {pipeline_mode = #tpu.pipeline_mode<synchronous>, transform_indices = @transform_1, window_bounds = array<i64: 2, 32>}, {transform_indices = @transform_2, window_bounds = array<i64: 1, 2048>}, {transform_indices = @transform_3, window_bounds = array<i64: 1, 2048>}, {transform_indices = @transform_4, window_bounds = array<i64: 1, 8, 128>}, {transform_indices = @transform_5, window_bounds = array<i64: 1, 8, 128>}]} {
    %c0 = arith.constant 0 : index
    %c0_0 = arith.constant 0 : index
    %0 = vector.load %arg3[%c0, %c0_0] : memref<1x2048xf32, #tpu.memory_space<vmem>>, vector<1x2048xf32>
    %c0_1 = arith.constant 0 : index
    %c0_2 = arith.constant 0 : index
    %1 = vector.load %arg4[%c0_1, %c0_2] : memref<1x2048xf32, #tpu.memory_space<vmem>>, vector<1x2048xf32>
    %2 = arith.subf %0, %1 : vector<1x2048xf32>
    %3 = arith.mulf %2, %2 : vector<1x2048xf32>
    %4 = vector.shape_cast %3 : vector<1x2048xf32> to vector<1x1x2048xf32>
    %cst = arith.constant dense<0.000000e+00> : vector<1xf32>
    %5 = vector.multi_reduction <add>, %4, %cst [1, 2] : vector<1x1x2048xf32> to vector<1xf32>
    %6 = vector.shape_cast %5 : vector<1xf32> to vector<1x1x1xf32>
    %7 = vector.extract %6[0, 0, 0] : f32 from vector<1x1x1xf32>
    %8 = vector.broadcast %7 : f32 to vector<1x8x128xf32>
    %c0_3 = arith.constant 0 : index
    %c0_4 = arith.constant 0 : index
    %c0_5 = arith.constant 0 : index
    %9 = vector.load %arg5[%c0_3, %c0_4, %c0_5] : memref<1x8x128xf32, #tpu.memory_space<vmem>>, vector<1x8x128xf32>
    tpu.vector_store %arg5[%c0_3, %c0_4, %c0_5], %8 {strides = array<i32>} : memref<1x8x128xf32, #tpu.memory_space<vmem>>, vector<1x8x128xf32>,
    %c0_i32 = arith.constant 0 : i32
    %10 = arith.cmpi eq, %arg0, %c0_i32 : i32
    %11 = arith.extui %10 : i1 to i32
    %c0_i32_6 = arith.constant 0 : i32
    %12 = arith.cmpi ne, %11, %c0_i32_6 : i32
    scf.if %12 {
      %c0_7 = arith.constant 0 : index
      %c0_8 = arith.constant 0 : index
      %13 = vector.load %arg1[%c0_7, %c0_8] : memref<2x32xf32, #tpu.memory_space<vmem>>, vector<2x32xf32>
      %c0_9 = arith.constant 0 : index
      %c0_10 = arith.constant 0 : index
      %14 = vector.load %arg2[%c0_9, %c0_10] : memref<2x32xf32, #tpu.memory_space<vmem>>, vector<2x32xf32>
      %cst_11 = arith.constant 1.000000e+00 : f32
      %15 = vector.broadcast %cst_11 : f32 to vector<2x32xf32>
      %16 = arith.addf %15, %14 : vector<2x32xf32>
      %17 = arith.mulf %13, %13 : vector<2x32xf32>
      %18 = arith.subf %16, %17 : vector<2x32xf32>
      %19 = math.exp %14 : vector<2x32xf32>
      %20 = arith.subf %18, %19 : vector<2x32xf32>
      %21 = vector.shape_cast %20 : vector<2x32xf32> to vector<1x2x32xf32>
      %cst_12 = arith.constant dense<0.000000e+00> : vector<1xf32>
      %22 = vector.multi_reduction <add>, %21, %cst_12 [1, 2] : vector<1x2x32xf32> to vector<1xf32>
      %23 = vector.shape_cast %22 : vector<1xf32> to vector<1x1x1xf32>
      %24 = vector.extract %23[0, 0, 0] : f32 from vector<1x1x1xf32>
      %cst_13 = arith.constant -5.000000e-01 : f32
      %25 = arith.mulf %cst_13, %24 : f32
      %cst_14 = arith.constant 5.000000e-01 : f32
      %26 = arith.mulf %25, %cst_14 : f32
      %27 = vector.broadcast %26 : f32 to vector<1x8x128xf32>
      %c0_15 = arith.constant 0 : index
      %c0_16 = arith.constant 0 : index
      %c0_17 = arith.constant 0 : index
      %28 = vector.load %arg6[%c0_15, %c0_16, %c0_17] : memref<1x8x128xf32, #tpu.memory_space<vmem>>, vector<1x8x128xf32>
      tpu.vector_store %arg6[%c0_15, %c0_16, %c0_17], %27 {strides = array<i32>} : memref<1x8x128xf32, #tpu.memory_space<vmem>>, vector<1x8x128xf32>,
    } else {
    }
    return
  }
  func.func @transform_0(%arg0: i32) -> (i32, i32) {
    %c0_i32 = arith.constant 0 : i32
    %c0_i32_0 = arith.constant 0 : i32
    %c0_i32_1 = arith.constant 0 : i32
    return %c0_i32, %c0_i32_0 : i32, i32
  }
  func.func @transform_1(%arg0: i32) -> (i32, i32) {
    %c0_i32 = arith.constant 0 : i32
    %c0_i32_0 = arith.constant 0 : i32
    %c0_i32_1 = arith.constant 0 : i32
    return %c0_i32, %c0_i32_0 : i32, i32
  }
  func.func @transform_2(%arg0: i32) -> (i32, i32) {
    %c0_i32 = arith.constant 0 : i32
    %c0_i32_0 = arith.constant 0 : i32
    return %arg0, %c0_i32 : i32, i32
  }
  func.func @transform_3(%arg0: i32) -> (i32, i32) {
    %c0_i32 = arith.constant 0 : i32
    %c0_i32_0 = arith.constant 0 : i32
    return %arg0, %c0_i32 : i32, i32
  }
  func.func @transform_4(%arg0: i32) -> (i32, i32, i32) {
    %c0_i32 = arith.constant 0 : i32
    %c0_i32_0 = arith.constant 0 : i32
    %c0_i32_1 = arith.constant 0 : i32
    return %arg0, %c0_i32, %c0_i32_0 : i32, i32, i32
  }
  func.func @transform_5(%arg0: i32) -> (i32, i32, i32) {
    %c0_i32 = arith.constant 0 : i32
    %c0_i32_0 = arith.constant 0 : i32
    %c0_i32_1 = arith.constant 0 : i32
    return %arg0, %c0_i32, %c0_i32_0 : i32, i32, i32
  }
}

</mosaic_0001>

<bundles_post_ra>
// kernel: tpu_custom_call.1
= control target key start
LH: loop header
LB: loop body
LE: loop exit
PB: predicated region body
PF: predicated region fallthrough
CT: control target
= control target key end

     0   :  { %11 = vsyncpa [#allocation3], 0  ;;  %s499_s0 = inlined_call_operand.hbm [shape: f32[2,32], index: 0, kind: input, shape index: {}]   ;;  %s500_s1 = inlined_call_operand.vmem [shape: f32[2,32], index: 1, kind: input, shape index: {}]   ;;  %s501_s2 = inlined_call_operand.hbm [shape: f32[1,2048], index: 2, kind: input, shape index: {}]   ;;  %s502_s3 = inlined_call_operand.hbm [shape: f32[1,2048], index: 3, kind: input, shape index: {}]   ;;  %s503_s4 = inlined_call_operand.hbm [shape: f32[1,8,128], index: 4, kind: output, shape index: {0}]   ;;  %s504_s5 = inlined_call_operand.hbm [shape: f32[1,8,128], index: 5, kind: output, shape index: {1}]  }
   0x1   :  { %12 = vsyncpa [#allocation6], 0 }
   0x2   :  { %13 = vsyncpa [#allocation4], 0 }
   0x3   :  { %14 = vsyncpa [#allocation10], 0  ;;  %s375_s18 = smov [#allocation5]   ;;  %s376_s20 = smov [#allocation2]  }
   0x4   :  { %s33_s19 = sshll.u32 %s375_s18, 4  ;;  %s21_s21 = sshll.u32 %s376_s20, 4  ;;  %s34_s19 = int_to_ptr.vmem [resolvable:$true] %s33_s19  ;;  %s22_s21 = int_to_ptr.vmem [resolvable:$true] %s21_s21 }
   0x5   :  { %s257_s24 = scalar_lea.hbm %s501_s2, 256 }
   0x6   :  { %p258_p0 = scmp.ne.s32.totalorder %s501_s2, %s257_s24  ;;  %p261_p1 = scmp.lt.u32.totalorder %s257_s24, %s501_s2 }
   0x8   :  { %p263_p2 = pnand %p261_p1, %p258_p0 }
   0xa   :  { %266 = shalt.err (!%p263_p2)
}
   0xb   :  { %s267_s29 = scalar_lea.vmem %s34_s19, 256  ;;  %p272_p4 = scmp.lt.s32.totalorder %s34_s19, %s34_s19 }
   0xc   :  { %p268_p3 = scmp.ne.s32.totalorder %s34_s19, %s267_s29  ;;  %p273_p5 = scmp.lt.s32.totalorder %s267_s29, %s267_s29 }
   0xe   :  { %p274_p6 = por %p273_p5, %p272_p4 }
  0x10   :  { %p275_p7 = pnand %p274_p6, %p268_p3 }
  0x12   :  { %278 = shalt.err (!%p275_p7)
}
  0x13   :  { %36 = dma.hbm_to_vmem [thread:$0]  %s501_s2, 256, %s34_s19, [#allocation6]  }
  0x14   :  { %s279_s9 = scalar_lea.hbm %s499_s0, 32 }
  0x15   :  { %p280_p8 = scmp.ne.s32.totalorder %s499_s0, %s279_s9  ;;  %p283_p9 = scmp.lt.u32.totalorder %s279_s9, %s499_s0 }
  0x17   :  { %p285_p10 = pnand %p283_p9, %p280_p8 }
  0x19   :  { %288 = shalt.err (!%p285_p10)
}
  0x1a   :  { %s289_s14 = scalar_lea.vmem %s22_s21, 32  ;;  %p294_p12 = scmp.lt.s32.totalorder %s22_s21, %s22_s21 }
  0x1b   :  { %p290_p11 = scmp.ne.s32.totalorder %s22_s21, %s289_s14  ;;  %p295_p13 = scmp.lt.s32.totalorder %s289_s14, %s289_s14 }
  0x1d   :  { %p296_p0 = por %p295_p13, %p294_p12 }
  0x1f   :  { %p297_p1 = pnand %p296_p0, %p290_p11 }
  0x21   :  { %300 = shalt.err (!%p297_p1)
}
  0x22   :  { %24 = dma.hbm_to_vmem [thread:$0]  %s499_s0, 32, %s22_s21, [#allocation3]  }
  0x23   :  { %s377_s16 = smov [#allocation7]   ;;  %s301_s20 = scalar_lea.hbm %s502_s3, 256 }
  0x24   :  { %s43_s17 = sshll.u32 %s377_s16, 4  ;;  %p302_p2 = scmp.ne.s32.totalorder %s502_s3, %s301_s20  ;;  %s44_s17 = int_to_ptr.vmem [resolvable:$true] %s43_s17 }
  0x25   :  { %p305_p3 = scmp.lt.u32.totalorder %s301_s20, %s502_s3 }
  0x27   :  { %p307_p4 = pnand %p305_p3, %p302_p2 }
  0x29   :  { %310 = shalt.err (!%p307_p4)
}
  0x2a   :  { %s311_s26 = scalar_lea.vmem %s44_s17, 256  ;;  %p316_p6 = scmp.lt.s32.totalorder %s44_s17, %s44_s17 }
  0x2b   :  { %p312_p5 = scmp.ne.s32.totalorder %s44_s17, %s311_s26  ;;  %p317_p7 = scmp.lt.s32.totalorder %s311_s26, %s311_s26 }
  0x2d   :  { %p318_p8 = por %p317_p7, %p316_p6 }
  0x2f   :  { %p319_p9 = pnand %p318_p8, %p312_p5 }
  0x31   :  { %322 = shalt.err (!%p319_p9)
}
  0x32   :  { %46 = dma.hbm_to_vmem [thread:$0]  %s502_s3, 256, %s44_s17, [#allocation6]  }
  0x33   :  { %367 = dma.done.wait [#allocation3], 32  }
  0x34   :  { %368 = vsyncadd [#allocation3], 4294967264 }
  0x35   :  { %369 = dma.done.wait [#allocation6], 512  }
  0x36   :  { %370 = vsyncadd [#allocation6], 4294966784  ;;  %v66_v0 = vlaneseq  ;;  %v56_v2 = vld [vmem:[#allocation5] sm:$0xff]  ;;  %v58_v3 = vld [vmem:[#allocation7] sm:$0xff]  ;;  %vm146_vm0 = vcmask 1040384   ;;  %vm201_vm1 = vcmask 254976  }
  0x37   :  { %v60_v4 = vsub.f32 %v56_v2, %v58_v3  ;;  %v57_v10 = vld [vmem:[#allocation5 + $0x8] sm:$0xff]  ;;  %v59_v11 = vld [vmem:[#allocation7 + $0x8] sm:$0xff] }
  0x38   :  { %v446_v1 = vshrl.u32 %v66_v0, 7  ;;  %v61_v18 = vsub.f32 %v57_v10, %v59_v11  ;;  %v194_v38 = vld [vmem:[%s500_s1] sm:$0x3]  ;;  %s378_s1 = smov [#allocation8]  }
  0x39   :  { %v62_v8 = vmul.f32 %v60_v4, %v60_v4  ;;  %v198_v43 = vmul.f32 1.442695, %v194_v38  ;;  %v193_v53 = vld [vmem:[#allocation2] sm:$0x3]  ;;  %v195_v59 = vadd.f32 1.0, %v194_v38  ;;  %s222_s28 = sshll.u32 %s378_s1, 4  ;;  %s223_s28 = int_to_ptr.vmem [resolvable:$true] %s222_s28 }
  0x3a   :  { %v68_v5 = vsub.s32 0, %v446_v1  ;;  %v72_v6 = vsub.s32 1, %v446_v1  ;;  %v76_v7 = vsub.s32 2, %v446_v1  ;;  %v80_v9 = vsub.s32 3, %v446_v1  ;;  %s323_s30 = scalar_lea.vmem %s223_s28, 128  ;;  %p328_p11 = scmp.lt.s32.totalorder %s223_s28, %s223_s28 }
  0x3b   :  { %v84_v15 = vsub.s32 4, %v446_v1  ;;  %v88_v17 = vsub.s32 5, %v446_v1  ;;  %v92_v19 = vsub.s32 6, %v446_v1  ;;  %v96_v26 = vsub.s32 7, %v446_v1  ;;  %p324_p10 = scmp.ne.s32.totalorder %s223_s28, %s323_s30  ;;  %p329_p12 = scmp.lt.s32.totalorder %s323_s30, %s323_s30 }
  0x3c   :  { %v69_v12 = vrot.slane %v62_v8, %v68_v5  ;;  %v73_v13 = vrot.slane %v62_v8, %v72_v6  ;;  %v77_v14 = vrot.slane %v62_v8, %v76_v7  ;;  %v81_v16 = vrot.slane %v62_v8, %v80_v9 }
  0x3d   :  { %v85_v20 = vrot.slane %v62_v8, %v84_v15  ;;  %v89_v25 = vrot.slane %v62_v8, %v88_v17  ;;  %v63_v29 = vmul.f32 %v61_v18, %v61_v18  ;;  %v93_v30 = vrot.slane %v62_v8, %v92_v19  ;;  %p330_p13 = por %p329_p12, %p328_p11 }
  0x3e   :  { %v147_v21 = vsel %vm146_vm0, %v69_v12, 0.0  ;;  %v148_v22 = vsel %vm146_vm0, %v73_v13, 0.0  ;;  %v150_v23 = vsel %vm146_vm0, %v77_v14, 0.0  ;;  %v152_v27 = vsel %vm146_vm0, %v81_v16, 0.0 }
  0x3f   :  { %v149_v24 = vadd.f32 %v148_v22, %v147_v21  ;;  %v154_v31 = vsel %vm146_vm0, %v85_v20, 0.0  ;;  %v97_v33 = vrot.slane %v62_v8, %v96_v26  ;;  %v156_v34 = vsel %vm146_vm0, %v89_v25, 0.0  ;;  %p331_p0 = pnand %p330_p13, %p324_p10 }
  0x40   :  { %v101_v36 = vrot.slane %v63_v29, %v68_v5  ;;  %v158_v37 = vsel %vm146_vm0, %v93_v30, 0.0  ;;  %v105_v40 = vrot.slane %v63_v29, %v72_v6  ;;  %v109_v44 = vrot.slane %v63_v29, %v76_v7 }
  0x41   :  { %v151_v28 = vadd.f32 %v150_v23, %v149_v24  ;;  %v160_v41 = vsel %vm146_vm0, %v97_v33, 0.0  ;;  %v113_v47 = vrot.slane %v63_v29, %v80_v9  ;;  %255 = vpow2.f32 %v198_v43 }
  0x42   :  { %v162_v45 = vsel %vm146_vm0, %v101_v36, 0.0  ;;  %v164_v48 = vsel %vm146_vm0, %v105_v40, 0.0  ;;  %v117_v50 = vrot.slane %v63_v29, %v84_v15  ;;  %v166_v51 = vsel %vm146_vm0, %v109_v44, 0.0 }
  0x43   :  { %v153_v32 = vadd.f32 %v152_v27, %v151_v28  ;;  %v121_v54 = vrot.slane %v63_v29, %v88_v17  ;;  %v168_v55 = vsel %vm146_vm0, %v113_v47, 0.0  ;;  %v125_v57 = vrot.slane %v63_v29, %v92_v19 }
  0x44   :  { %v170_v58 = vsel %vm146_vm0, %v117_v50, 0.0  ;;  %v196_v60 = vmul.f32 %v193_v53, %v193_v53  ;;  %v129_v62 = vrot.slane %v63_v29, %v96_v26 }
  0x45   :  { %v155_v35 = vadd.f32 %v154_v31, %v153_v32  ;;  %v172_v63 = vsel %vm146_vm0, %v121_v54, 0.0  ;;  %v174_v1 = vsel %vm146_vm0, %v125_v57, 0.0 }
  0x46   :  { %v197_v2 = vsub.f32 %v195_v59, %v196_v60  ;;  %v176_v5 = vsel %vm146_vm0, %v129_v62, 0.0 }
  0x47   :  { %v157_v39 = vadd.f32 %v156_v34, %v155_v35 }
  0x49   :  { %v159_v42 = vadd.f32 %v158_v37, %v157_v39 }
  0x4b   :  { %v161_v46 = vadd.f32 %v160_v41, %v159_v42  ;;  %v256_v3 = vpop.eup %255 }
  0x4c   :  { %v200_v7 = vsub.f32 %v197_v2, %v256_v3 }
  0x4d   :  { %v163_v49 = vadd.f32 %v162_v45, %v161_v46 }
  0x4e   :  { %v202_v9 = vsel %vm201_vm1, %v200_v7, 0.0 }
  0x4f   :  { %v165_v52 = vadd.f32 %v164_v48, %v163_v49 }
  0x51   :  { %v167_v56 = vadd.f32 %v166_v51, %v165_v52 }
  0x53   :  { %v169_v61 = vadd.f32 %v168_v55, %v167_v56 }
  0x55   :  { %v171_v0 = vadd.f32 %v170_v58, %v169_v61 }
  0x57   :  { %v173_v4 = vadd.f32 %v172_v63, %v171_v0 }
  0x59   :  { %v175_v6 = vadd.f32 %v174_v1, %v173_v4 }
  0x5b   :  { %v177_v8 = vadd.f32 %v176_v5, %v175_v6 }
  0x5d   :  { %178 = vadd.xlane.f32.xlu0 %v177_v8 }
  0x61   :  { %203 = vadd.xlane.f32.xlu0 %v202_v9 }
  0xea   :  { %v179_v10 = vpop.xlane.xlu0 %178 }
  0xeb   :  { %v180_v11 = vrot.slane %v179_v10, 4 }
  0xed   :  { %v181_v12 = vadd.f32 %v180_v11, %v179_v10 }
  0xee   :  { %v204_v13 = vpop.xlane.xlu0 %203 }
  0xef   :  { %v182_v14 = vrot.slane %v181_v12, 2  ;;  %v205_v15 = vrot.slane %v204_v13, 4 }
  0xf1   :  { %v206_v16 = vadd.f32 %v205_v15, %v204_v13  ;;  %v183_v17 = vadd.f32 %v182_v14, %v181_v12 }
  0xf3   :  { %v207_v18 = vrot.slane %v206_v16, 2  ;;  %v184_v19 = vrot.slane %v183_v17, 1 }
  0xf5   :  { %v208_v20 = vadd.f32 %v207_v18, %v206_v16  ;;  %v185_v21 = vadd.f32 %v184_v19, %v183_v17 }
  0xf7   :  { %246 = vpush %v185_v21  ;;  %v209_v22 = vrot.slane %v208_v20, 1 }
  0xf9   :  { %v210_v23 = vadd.f32 %v209_v22, %v208_v20 }
  0xfb   :  { %248 = vpush %v210_v23 }
 0x128   :  { %s247_s29 = spop %246 }
 0x129   :  { %v187_v24 = vstv %s247_s29 }
 0x12a   :  { %188 = vst [vmem:[#allocation8] sm:$0xff] %v187_v24 }
 0x12b   :  { %334 = shalt.err (!%p331_p0)
}
 0x12c   :  { %s335_s8 = scalar_lea.hbm %s503_s4, 128 }
 0x12d   :  { %p336_p1 = scmp.ne.s32.totalorder %s503_s4, %s335_s8  ;;  %p339_p2 = scmp.lt.u32.totalorder %s335_s8, %s503_s4 }
 0x12f   :  { %p341_p3 = pnand %p339_p2, %p336_p1 }
 0x131   :  { %344 = shalt.err (!%p341_p3)
}
 0x132   :  { %225 = dma.vmem_to_hbm [thread:$0]  %s223_s28, 128, %s503_s4, [#allocation4]  }
 0x133   :  { %s249_s2 = spop %248  ;;  %s379_s16 = smov [#allocation9]  }
 0x134   :  { %s212_s15 = smul.f32 -0.5, %s249_s2  ;;  %s232_s17 = sshll.u32 %s379_s16, 4  ;;  %s233_s17 = int_to_ptr.vmem [resolvable:$true] %s232_s17 }
 0x135   :  { %s345_s19 = scalar_lea.vmem %s233_s17, 128  ;;  %p350_p5 = scmp.lt.s32.totalorder %s233_s17, %s233_s17 }
 0x136   :  { %s213_s18 = smul.f32 0.5, %s212_s15  ;;  %p346_p4 = scmp.ne.s32.totalorder %s233_s17, %s345_s19 }
 0x137   :  { %p351_p6 = scmp.lt.s32.totalorder %s345_s19, %s345_s19 }
 0x138   :  { %v214_v25 = vstv %s213_s18 }
 0x139   :  { %215 = vst [vmem:[#allocation9] sm:$0xff] %v214_v25  ;;  %p352_p7 = por %p351_p6, %p350_p5 }
 0x13b   :  { %p353_p8 = pnand %p352_p7, %p346_p4 }
 0x13d   :  { %356 = shalt.err (!%p353_p8)
}
 0x13e   :  { %s357_s23 = scalar_lea.hbm %s504_s5, 128 }
 0x13f   :  { %p358_p9 = scmp.ne.s32.totalorder %s504_s5, %s357_s23  ;;  %p361_p10 = scmp.lt.u32.totalorder %s357_s23, %s504_s5 }
 0x141   :  { %p363_p11 = pnand %p361_p10, %p358_p9 }
 0x143   :  { %366 = shalt.err (!%p363_p11)
}
 0x144   :  { %235 = dma.vmem_to_hbm [thread:$0]  %s233_s17, 128, %s504_s5, [#allocation10]  }
 0x145   :  { %371 = dma.done.wait [#allocation4], 128  }
 0x146   :  { %372 = vsyncadd [#allocation4], 4294967168 }
 0x147   :  { %373 = dma.done.wait [#allocation10], 128  }
 0x148   :  { %374 = vsyncadd [#allocation10], 4294967168 }
 0x149   :  { %242 = vsyncpa [#allocation3], 1 }
 0x14a   :  { %243 = vsyncpa [#allocation6], 1 }
 0x14b   :  { %244 = vsyncpa [#allocation4], 1 }
 0x14c   :  { %245 = vsyncpa [#allocation10], 1 }

</bundles_post_ra>
